<compile_context>
chip_gen: v7x
topology: tpu7x:2x2x1
jax: 0.10.0
libtpu: 0.0.40
codegen_flags: <defaults>
</compile_context>

<pallas_src>
import math

import jax
import jax.numpy as jnp
from jax.experimental import pallas as pl
from jax.experimental.pallas import tpu as pltpu


def _round_up(x: int, m: int) -> int:
    return ((x + m - 1) // m) * m


def _transition_kernel(eps: float, hidden: int):
    def kernel(x_ref, gamma_ref, beta_ref, wab_ref, ws_ref, o_ref):
        # x_ref: (TM, D) f32 | gamma/beta: (1, D) f32
        # wab_ref: (D, 2H) bf16  (expand_a | expand_b concatenated)
        # ws_ref:  (H, D)  bf16
        x = x_ref[...].astype(jnp.float32)                       # (TM, D)

        # LayerNorm over the feature dim (eps matches nn.LayerNorm default).
        # Full D is present in every block, so the row stats are exact.
        mean = jnp.mean(x, axis=-1, keepdims=True)               # (TM, 1)
        xc = x - mean
        var = jnp.mean(xc * xc, axis=-1, keepdims=True)          # (TM, 1)
        inv = jax.lax.rsqrt(var + eps)
        ln = xc * inv * gamma_ref[...] + beta_ref[...]           # (TM, D) f32

        # Fused expansion matmul: one MXU pass produces both a and b.
        ab = jnp.dot(ln.astype(jnp.bfloat16), wab_ref[...],
                     preferred_element_type=jnp.float32)         # (TM, 2H) f32
        a = ab[:, :hidden]                                       # (TM, H)
        b = ab[:, hidden:]                                       # (TM, H)

        # swish(a, b) = a * sigmoid(a) * b  -- f32 on VPU/EUP.
        s = a * jax.nn.sigmoid(a) * b                            # (TM, H) f32

        # Squeeze projection back to D (bf16 operands, f32 accumulate).
        o = jnp.dot(s.astype(jnp.bfloat16), ws_ref[...],
                    preferred_element_type=jnp.float32)          # (TM, D) f32
        o_ref[...] = o.astype(o_ref.dtype)

    return kernel


def transition(x: jax.Array,
               gamma: jax.Array,
               beta: jax.Array,
               w_expand_a: jax.Array,
               w_expand_b: jax.Array,
               w_squeeze: jax.Array,
               *,
               eps: float = 1e-5,
               block_rows: int = 512) -> jax.Array:
    """Transition forward.

    x:          [..., D]
    gamma/beta: [1, D]     (LayerNorm affine params)
    w_expand_a: [D, H]     (H = D * n; already transposed vs. torch Linear)
    w_expand_b: [D, H]
    w_squeeze:  [H, D]
    returns:    [..., D]
    """
    orig_shape = x.shape
    D = orig_shape[-1]
    H = w_expand_a.shape[1]
    assert w_expand_a.shape == (D, H)
    assert w_expand_b.shape == (D, H)
    assert w_squeeze.shape == (H, D)

    N = math.prod(orig_shape[:-1])
    x2 = x.reshape(N, D)

    # Fuse the two expansion weights into one (D, 2H) matrix; bf16 operands
    # for the MXU (f32 accumulation is requested inside the kernel).
    w_ab = jnp.concatenate([w_expand_a, w_expand_b], axis=1).astype(jnp.bfloat16)
    w_sq = w_squeeze.astype(jnp.bfloat16)

    # Row tile: large to amortize per-step overhead, multiple of 8 (sublane),
    # but capped so the grid has >= 2 steps whenever possible so the single
    # "parallel" axis can be split across both TensorCores on v7x.
    TM = min(block_rows, _round_up(N, 8))
    if N > 8 and _round_up(N, TM) // TM < 2:
        TM = _round_up(-(-N // 2), 8)
    Npad = _round_up(N, TM)
    if Npad != N:
        # Zero rows LayerNorm to `beta`, produce finite garbage, and are
        # sliced off below — harmless.
        x2 = jnp.pad(x2, ((0, Npad - N), (0, 0)))

    grid = (Npad // TM,)

    w_bytes = 2 * (D * 2 * H + H * D)        # bf16 weights
    cost = pl.CostEstimate(
        flops=2 * Npad * D * H * 3,          # fused expand (2H) + squeeze
        transcendentals=Npad * H,            # sigmoid
        bytes_accessed=2 * Npad * D * 4 + w_bytes,
    )

    # Invariant blocks (constant index_map) are single-buffered.
    resident = pl.Buffered(1)

    out = pl.pallas_call(
        _transition_kernel(eps, H),
        out_shape=jax.ShapeDtypeStruct((Npad, D), x.dtype),
        grid_spec=pltpu.PrefetchScalarGridSpec(
            num_scalar_prefetch=0,
            grid=grid,
            in_specs=[
                pl.BlockSpec((TM, D), lambda i: (i, 0)),                 # x row tile
                pl.BlockSpec((1, D), lambda i: (0, 0),
                             pipeline_mode=resident),                    # gamma
                pl.BlockSpec((1, D), lambda i: (0, 0),
                             pipeline_mode=resident),                    # beta
                pl.BlockSpec((D, 2 * H), lambda i: (0, 0),
                             pipeline_mode=resident),                    # W_expand (a|b)
                pl.BlockSpec((H, D), lambda i: (0, 0),
                             pipeline_mode=resident),                    # W_squeeze
            ],
            out_specs=pl.BlockSpec((TM, D), lambda i: (i, 0)),
        ),
        compiler_params=pltpu.CompilerParams(
            dimension_semantics=("parallel",),
        ),
        cost_estimate=cost,
    )(x2, gamma, beta, w_ab, w_sq)

    if Npad != N:
        out = out[:N]
    return out.reshape(orig_shape)


if __name__ == "__main__":
    # Module defaults: d_hidden=128 (keeps blocks lane-dense), expansion n=4.
    d_hidden = 128
    n = 4
    H = d_hidden * n
    B, S = 2, 16
    eps = 1e-5

    key = jax.random.PRNGKey(0)
    k_x, k_a, k_b, k_s = jax.random.split(key, 4)

    x = jax.random.normal(k_x, (B, S, d_hidden), dtype=jnp.float32)

    # LayerNorm params at their nn.LayerNorm defaults (weight=1, bias=0).
    gamma = jnp.ones((1, d_hidden), dtype=jnp.float32)
    beta = jnp.zeros((1, d_hidden), dtype=jnp.float32)

    # Linear weights (stored as [in, out], i.e. torch weight transposed).
    # NOTE: in the real module `squeeze` uses init='final' (zeros); random
    # weights are used here purely so the correctness check is meaningful.
    w_expand_a = jax.random.normal(k_a, (d_hidden, H), dtype=jnp.float32) * 0.02
    w_expand_b = jax.random.normal(k_b, (d_hidden, H), dtype=jnp.float32) * 0.02
    w_squeeze = jax.random.normal(k_s, (H, d_hidden), dtype=jnp.float32) * 0.02

    out = transition(x, gamma, beta, w_expand_a, w_expand_b, w_squeeze, eps=eps)
    out = jax.block_until_ready(out)

    # Pure-JAX f32 reference with identical forward semantics. Kernel uses
    # bf16 MXU operands with f32 accumulation -> looser tolerance.
    mean = jnp.mean(x, axis=-1, keepdims=True)
    var = jnp.mean((x - mean) ** 2, axis=-1, keepdims=True)
    ln = (x - mean) / jnp.sqrt(var + eps) * gamma[0] + beta[0]
    a = ln @ w_expand_a
    b = ln @ w_expand_b
    s = a * jax.nn.sigmoid(a) * b
    ref = s @ w_squeeze

    assert out.shape == (B, S, d_hidden)
    max_err = float(jnp.max(jnp.abs(out - ref)))
    assert jnp.allclose(out, ref, atol=2e-2, rtol=5e-2), (
        f"mismatch vs reference, max abs err {max_err}")

    print("KERNEL_OK")
</pallas_src>

<mosaic_0001>
module attributes {stable_mosaic.version = 11 : i64} {
  func.func @kernel(%arg0: i32, %arg1: memref<16x128xf32, #tpu.memory_space<vmem>>, %arg2: memref<1x128xf32, #tpu.memory_space<vmem>>, %arg3: memref<1x128xf32, #tpu.memory_space<vmem>>, %arg4: memref<128x1024xbf16, #tpu.memory_space<vmem>>, %arg5: memref<512x128xbf16, #tpu.memory_space<vmem>>, %arg6: memref<16x128xf32, #tpu.memory_space<vmem>>) attributes {dimension_semantics = [#tpu.dimension_semantics<parallel>], iteration_bounds = array<i64: 2>, scalar_prefetch = 0 : i64, scratch_operands = 0 : i64, tpu.core_type = #tpu.core_type<tc>, window_params = [{transform_indices = @transform_0, window_bounds = array<i64: 16, 128>}, {pipeline_mode = #tpu.pipeline_mode<synchronous>, transform_indices = @transform_1, window_bounds = array<i64: 1, 128>}, {pipeline_mode = #tpu.pipeline_mode<synchronous>, transform_indices = @transform_2, window_bounds = array<i64: 1, 128>}, {pipeline_mode = #tpu.pipeline_mode<synchronous>, transform_indices = @transform_3, window_bounds = array<i64: 128, 1024>}, {pipeline_mode = #tpu.pipeline_mode<synchronous>, transform_indices = @transform_4, window_bounds = array<i64: 512, 128>}, {transform_indices = @transform_5, window_bounds = array<i64: 16, 128>}]} {
    %c0 = arith.constant 0 : index
    %c0_0 = arith.constant 0 : index
    %0 = vector.load %arg1[%c0, %c0_0] : memref<16x128xf32, #tpu.memory_space<vmem>>, vector<16x128xf32>
    %cst = arith.constant dense<0.000000e+00> : vector<16xf32>
    %1 = vector.multi_reduction <add>, %0, %cst [1] : vector<16x128xf32> to vector<16xf32>
    %2 = vector.shape_cast %1 : vector<16xf32> to vector<16x1xf32>
    %cst_1 = arith.constant 1.280000e+02 : f32
    %3 = vector.broadcast %cst_1 : f32 to vector<16x1xf32>
    %4 = arith.divf %2, %3 : vector<16x1xf32>
    %5 = vector.broadcast %4 : vector<16x1xf32> to vector<16x128xf32>
    %6 = arith.subf %0, %5 : vector<16x128xf32>
    %7 = arith.mulf %6, %6 : vector<16x128xf32>
    %cst_2 = arith.constant dense<0.000000e+00> : vector<16xf32>
    %8 = vector.multi_reduction <add>, %7, %cst_2 [1] : vector<16x128xf32> to vector<16xf32>
    %9 = vector.shape_cast %8 : vector<16xf32> to vector<16x1xf32>
    %cst_3 = arith.constant 1.280000e+02 : f32
    %10 = vector.broadcast %cst_3 : f32 to vector<16x1xf32>
    %11 = arith.divf %9, %10 : vector<16x1xf32>
    %cst_4 = arith.constant 9.99999974E-6 : f32
    %12 = vector.broadcast %cst_4 : f32 to vector<16x1xf32>
    %13 = arith.addf %11, %12 : vector<16x1xf32>
    %14 = math.rsqrt %13 : vector<16x1xf32>
    %15 = vector.broadcast %14 : vector<16x1xf32> to vector<16x128xf32>
    %16 = arith.mulf %6, %15 : vector<16x128xf32>
    %c0_5 = arith.constant 0 : index
    %c0_6 = arith.constant 0 : index
    %17 = vector.load %arg2[%c0_5, %c0_6] : memref<1x128xf32, #tpu.memory_space<vmem>>, vector<1x128xf32>
    %18 = vector.broadcast %17 : vector<1x128xf32> to vector<16x128xf32>
    %19 = arith.mulf %16, %18 : vector<16x128xf32>
    %c0_7 = arith.constant 0 : index
    %c0_8 = arith.constant 0 : index
    %20 = vector.load %arg3[%c0_7, %c0_8] : memref<1x128xf32, #tpu.memory_space<vmem>>, vector<1x128xf32>
    %21 = vector.broadcast %20 : vector<1x128xf32> to vector<16x128xf32>
    %22 = arith.addf %19, %21 : vector<16x128xf32>
    %23 = arith.truncf %22 : vector<16x128xf32> to vector<16x128xbf16>
    %c0_9 = arith.constant 0 : index
    %c0_10 = arith.constant 0 : index
    %24 = vector.load %arg4[%c0_9, %c0_10] : memref<128x1024xbf16, #tpu.memory_space<vmem>>, vector<128x1024xbf16>
    %cst_11 = arith.constant dense<0.000000e+00> : vector<16x1024xf32>
    %25 = tpu.matmul %23, %24, %cst_11 {dimension_numbers = #tpu.dot_dimension_numbers<[1], [0], [0], [1], [0, 0, 1, 1], [], []>} : vector<16x128xbf16>, vector<128x1024xbf16>, vector<16x1024xf32> -> vector<16x1024xf32>
    %26 = vector.extract_strided_slice %25 {offsets = [0, 0], sizes = [16, 512], strides = [1, 1]} : vector<16x1024xf32> to vector<16x512xf32>
    %27 = vector.extract_strided_slice %25 {offsets = [0, 512], sizes = [16, 512], strides = [1, 1]} : vector<16x1024xf32> to vector<16x512xf32>
    %28 = arith.negf %26 : vector<16x512xf32>
    %29 = math.exp %28 : vector<16x512xf32>
    %cst_12 = arith.constant 1.000000e+00 : f32
    %30 = vector.broadcast %cst_12 : f32 to vector<16x512xf32>
    %31 = arith.addf %30, %29 : vector<16x512xf32>
    %32 = arith.divf %30, %31 : vector<16x512xf32>
    %33 = arith.mulf %26, %32 : vector<16x512xf32>
    %34 = arith.mulf %33, %27 : vector<16x512xf32>
    %35 = arith.truncf %34 : vector<16x512xf32> to vector<16x512xbf16>
    %c0_13 = arith.constant 0 : index
    %c0_14 = arith.constant 0 : index
    %36 = vector.load %arg5[%c0_13, %c0_14] : memref<512x128xbf16, #tpu.memory_space<vmem>>, vector<512x128xbf16>
    %cst_15 = arith.constant dense<0.000000e+00> : vector<16x128xf32>
    %37 = tpu.matmul %35, %36, %cst_15 {dimension_numbers = #tpu.dot_dimension_numbers<[1], [0], [0], [1], [0, 0, 1, 1], [], []>} : vector<16x512xbf16>, vector<512x128xbf16>, vector<16x128xf32> -> vector<16x128xf32>
    %c0_16 = arith.constant 0 : index
    %c0_17 = arith.constant 0 : index
    %38 = vector.load %arg6[%c0_16, %c0_17] : memref<16x128xf32, #tpu.memory_space<vmem>>, vector<16x128xf32>
    tpu.vector_store %arg6[%c0_16, %c0_17], %37 {strides = array<i32>} : memref<16x128xf32, #tpu.memory_space<vmem>>, vector<16x128xf32>,
    return
  }
  func.func @transform_0(%arg0: i32) -> (i32, i32) {
    %c0_i32 = arith.constant 0 : i32
    %c0_i32_0 = arith.constant 0 : i32
    return %arg0, %c0_i32 : i32, i32
  }
  func.func @transform_1(%arg0: i32) -> (i32, i32) {
    %c0_i32 = arith.constant 0 : i32
    %c0_i32_0 = arith.constant 0 : i32
    %c0_i32_1 = arith.constant 0 : i32
    return %c0_i32, %c0_i32_0 : i32, i32
  }
  func.func @transform_2(%arg0: i32) -> (i32, i32) {
    %c0_i32 = arith.constant 0 : i32
    %c0_i32_0 = arith.constant 0 : i32
    %c0_i32_1 = arith.constant 0 : i32
    return %c0_i32, %c0_i32_0 : i32, i32
  }
  func.func @transform_3(%arg0: i32) -> (i32, i32) {
    %c0_i32 = arith.constant 0 : i32
    %c0_i32_0 = arith.constant 0 : i32
    %c0_i32_1 = arith.constant 0 : i32
    return %c0_i32, %c0_i32_0 : i32, i32
  }
  func.func @transform_4(%arg0: i32) -> (i32, i32) {
    %c0_i32 = arith.constant 0 : i32
    %c0_i32_0 = arith.constant 0 : i32
    %c0_i32_1 = arith.constant 0 : i32
    return %c0_i32, %c0_i32_0 : i32, i32
  }
  func.func @transform_5(%arg0: i32) -> (i32, i32) {
    %c0_i32 = arith.constant 0 : i32
    %c0_i32_0 = arith.constant 0 : i32
    return %arg0, %c0_i32 : i32, i32
  }
}

</mosaic_0001>

<bundles_post_ra>
// kernel: tpu_custom_call.1
= control target key start
LH: loop header
LB: loop body
LE: loop exit
PB: predicated region body
PF: predicated region fallthrough
CT: control target
= control target key end

     0   :  { %10 = vsyncpa [#allocation3], 0  ;;  %s2164_s0 = inlined_call_operand.hbm [shape: f32[32,128], index: 0, kind: input, shape index: {}]   ;;  %s2165_s1 = inlined_call_operand.vmem [shape: f32[1,128], index: 1, kind: input, shape index: {}]   ;;  %s2166_s2 = inlined_call_operand.vmem [shape: f32[1,128], index: 2, kind: input, shape index: {}]   ;;  %s2167_s3 = inlined_call_operand.hbm [shape: bf16[128,1024], index: 3, kind: input, shape index: {}]   ;;  %s2168_s4 = inlined_call_operand.hbm [shape: bf16[512,128], index: 4, kind: input, shape index: {}]   ;;  %s2169_s5 = inlined_call_operand.hbm [shape: f32[32,128], index: 5, kind: output, shape index: {}]  }
   0x1   :  { %12 = vsyncpa [#allocation3 + $0x1], 0 }
   0x2   :  { %13 = vsyncpa [#allocation6], 0 }
   0x3   :  { %14 = vsyncpa [#allocation4], 0 }
   0x4   :  { %16 = vsyncpa [#allocation4 + $0x1], 0  ;;  %s1904_s18 = smov 0   ;;  %s1906_s19 = smov 0  }
   0x5   :  { %s1908_s20 = smov 0   ;;  %s1910_s21 = smov 0  }
   0x6 LB: > { %s1925_s22 = sadd.s32 4294967295, %s1859_s21   ;;  %s1389_s23 = sadd.s32 4294967294, %s1859_s21   ;;  %s1859_s21 = sphi %s1910_s21, %s2189_s21   ;;  %s1855_s20 = sphi %s1908_s20, %s2188_s20   ;;  %s1851_s19 = sphi %s1906_s19, %s2187_s19   ;;  %s1847_s18 = sphi %s1904_s18, %s2186_s18  }
   0x7   : > { %p42_p0 = scmp.ne.s32.totalorder %s1851_s19, %s1847_s18  ;;  %p2170_p1 = scmp.eq.s32.totalorder %s1925_s22, 0 }
   0x8   : > { %p156_p3 = scmp.eq.s32.totalorder %s1389_s23, 1  ;;  %p1390_p5 = scmp.ge.s32.totalorder %s1859_s21, 1 }
   0x9   : > { %p1934_p4 = por %p2170_p1, %p42_p0  ;;  %p163_p7 = scmp.lt.s32.totalorder %s1859_s21, 3 }
   0xa   : > { %p1939_p6 = por %p156_p3, %p42_p0  ;;  %s1861_s27 = smov [#allocation5]  }
   0xb   : > { %s2173_s24 = scalar_select %p1934_p4, 1, 0 }
   0xc   : > { %s2174_s25 = scalar_select %p1939_p6, 1, 0 }
   0xd   : > { %p1944_p8 = pnand %p1390_p5, %p163_p7  ;;  %s181_s28 = sshll.u32 %s1861_s27, 4  ;;  %s1948_s28 = int_to_ptr.vmem [resolvable:$true] %s181_s28 }
   0xe   : > { %s1862_s30 = smov [#allocation7]   ;;  %s1703_s9 = scalar_lea.hbm %s2167_s3, 8192 }
   0xf   : > { %p1571_p9 = pneg %p1944_p8  ;;  %s194_s6 = sshll.u32 %s1862_s30, 4  ;;  %s1959_s6 = int_to_ptr.vmem [resolvable:$true] %s194_s6 }
  0x10   : > { %p1704_p12 = scmp.ne.s32.totalorder %s2167_s3, %s1703_s9  ;;  %p1710_p5 = scmp.lt.u32.totalorder %s1703_s9, %s2167_s3 }
  0x11   : > { %p1955_p11 = pnand %p1571_p9, %p2170_p1 }
  0x13   : > { %p1705_p13 = pneg %p1955_p11 }
  0x15   : > { %p1706_p0 = pnand %p1705_p13, %p1704_p12 }
  0x17   : > { %p1707_p3 = pneg %p1706_p0 }
  0x19   : > { %p1712_p7 = pnand %p1710_p5, %p1707_p3 }
  0x1b   : > { %1715 = shalt.err (!%p1712_p7)
}
  0x1c   : > { %s1716_s14 = scalar_lea.vmem %s1948_s28, 8192  ;;  %p1724_p2 = scmp.lt.s32.totalorder %s1948_s28, %s1948_s28 }
  0x1d   : > { %p1717_p9 = scmp.ne.s32.totalorder %s1948_s28, %s1716_s14  ;;  %p1725_p12 = scmp.lt.s32.totalorder %s1716_s14, %s1716_s14 }
  0x1f   : > { %p1719_p10 = pnand %p1717_p9, %p1705_p13  ;;  %p1726_p0 = por %p1725_p12, %p1724_p2 }
  0x21   : > { %p1720_p1 = pneg %p1719_p10 }
  0x23   : > { %p1727_p6 = pnand %p1726_p0, %p1720_p1 }
  0x25   : > { %1730 = shalt.err (!%p1727_p6)
}
  0x26   : > { %s1863_s15 = smov 512   ;;  %s1864_s16 = smov 32  }
  0x27   : > { %1574 = dma.hbm_to_vmem [thread:$0]  (!%p1955_p11), %s2167_s3, 8192, %s1948_s28, [#allocation6], %s1863_s15, %s1863_s15, %s1864_s16  }
  0x28   : > { %s1731_s7 = scalar_lea.hbm %s2168_s4, 4096 }
  0x29   : > { %p1732_p2 = scmp.ne.s32.totalorder %s2168_s4, %s1731_s7  ;;  %p1738_p10 = scmp.lt.u32.totalorder %s1731_s7, %s2168_s4 }
  0x2b   : > { %p1734_p1 = pnand %p1732_p2, %p1705_p13 }
  0x2d   : > { %p1735_p6 = pneg %p1734_p1 }
  0x2f   : > { %p1740_p3 = pnand %p1738_p10, %p1735_p6 }
  0x31   : > { %1743 = shalt.err (!%p1740_p3)
}
  0x32   : > { %s1744_s28 = scalar_lea.vmem %s1959_s6, 4096  ;;  %p1752_p12 = scmp.lt.s32.totalorder %s1959_s6, %s1959_s6 }
  0x33   : > { %p1745_p5 = scmp.ne.s32.totalorder %s1959_s6, %s1744_s28  ;;  %p1753_p0 = scmp.lt.s32.totalorder %s1744_s28, %s1744_s28 }
  0x35   : > { %p1747_p7 = pnand %p1745_p5, %p1705_p13  ;;  %p1754_p2 = por %p1753_p0, %p1752_p12 }
  0x37   : > { %p1748_p9 = pneg %p1747_p7 }
  0x39   : > { %p1755_p1 = pnand %p1754_p2, %p1748_p9 }
  0x3b   : > { %1758 = shalt.err (!%p1755_p1)
}
  0x3c   : > { %s1865_s12 = smov 64   ;;  %s1866_s13 = smov 4  }
  0x3d   : > { %1577 = dma.hbm_to_vmem [thread:$0]  (!%p1955_p11), %s2168_s4, 4096, %s1959_s6, [#allocation6], %s1865_s12, %s1865_s12, %s1866_s13  }
  0x3e   : > { %s2014_s16 = sadd.s32 1, %s1859_s21   ;;  %s29_s23 = sadd.s32 1, %s1855_s20 }
  0x3f   : > { %s26_s17 = ssub.s32 %s1859_s21, %s2014_s16  ;;  %p36_p6 = scmp.ne.s32.totalorder %s1855_s20, %s1851_s19 }
  0x40   : > { %p27_p13 = scmp.eq.s32.totalorder %s26_s17, 0  ;;  %p37_p10 = scmp.eq.s32.totalorder %s1859_s21, 0 }
  0x41   : > { %p2177_p5 = scmp.eq.s32.totalorder %s1925_s22, 1  ;;  %p1588_p9 = scmp.lt.s32.totalorder %s1859_s21, 2 }
  0x42   : > { %s2023_s27 = scalar_select %p27_p13, %s1855_s20, %s29_s23  }
  0x43   : > { %p38_p3 = por %p37_p10, %p36_p6  ;;  %p2027_p7 = por %p2177_p5, %p36_p6 }
  0x44   : > { %s208_s29 = sand.u32 1, %s1855_s20   ;;  %s1513_s6 = sshll.u32 %s1859_s21, 8 }
  0x45   : > { %s2178_s30 = scalar_select %p2027_p7, 1, 0 }
  0x46   : > { %s1394_s7 = sshll.u32 %s208_s29, 4  ;;  %s2037_s10 = scalar_lea.hbm %s2164_s0, %s1513_s6 }
  0x47   : > { %s212_s11 = scalar_lea.vmem [#allocation2], %s1394_s7  ;;  %p2041_p11 = pnand %p1588_p9, %p38_p3 }
  0x48   : > { %s219_s28 = sshll.u32 %s212_s11, 4  ;;  %s2045_s13 = scalar_lea.sflag [#allocation3], %s208_s29  ;;  %s2039_s28 = int_to_ptr.vmem [resolvable:$true] %s219_s28 }
  0x49   : > { %s1759_s14 = scalar_lea.hbm %s2037_s10, 256  ;;  %p1761_p0 = pneg %p2041_p11 }
  0x4a   : > { %p1760_p12 = scmp.ne.s32.totalorder %s2037_s10, %s1759_s14  ;;  %s1764_s23 = scalar_lea.hbm %s2164_s0, 512 }
  0x4b   : > { %p1765_p13 = scmp.lt.u32.totalorder %s2037_s10, %s2164_s0  ;;  %p1766_p6 = scmp.lt.u32.totalorder %s1764_s23, %s1759_s14 }
  0x4c   : > { %p1762_p2 = pnand %p1761_p0, %p1760_p12  ;;  %p1768_p3 = scmp.lt.u32.totalorder %s1759_s14, %s2037_s10 }
  0x4d   : > { %p1767_p10 = por %p1766_p6, %p1765_p13 }
  0x4e   : > { %p1763_p1 = pneg %p1762_p2 }
  0x4f   : > { %p1769_p5 = por %p1768_p3, %p1767_p10 }
  0x51   : > { %p1770_p9 = pnand %p1769_p5, %p1763_p1 }
  0x53   : > { %1773 = shalt.err (!%p1770_p9)
}
  0x54   : > { %s1774_s29 = scalar_lea.vmem %s2039_s28, 256  ;;  %s1867_s8 = smov [#allocation2]  }
  0x55   : > { %p1775_p12 = scmp.ne.s32.totalorder %s2039_s28, %s1774_s29  ;;  %s1779_s9 = sshll.u32 %s1867_s8, 4  ;;  %s1780_s9 = int_to_ptr.vmem [resolvable:$false] %s1779_s9 }
  0x56   : > { %s1781_s11 = scalar_lea.vmem %s1780_s9, 512  ;;  %p1782_p4 = scmp.lt.s32.totalorder %s2039_s28, %s1780_s9 }
  0x57   : > { %p1777_p2 = pnand %p1775_p12, %p1761_p0  ;;  %p1783_p13 = scmp.lt.s32.totalorder %s1781_s11, %s1774_s29 }
  0x59   : > { %p1778_p7 = pneg %p1777_p2  ;;  %p1784_p6 = por %p1783_p13, %p1782_p4 }
  0x5b   : > { %p1785_p10 = pnand %p1784_p6, %p1778_p7 }
  0x5d   : > { %1788 = shalt.err (!%p1785_p10)
}
  0x5e   : > { %s1868_s14 = smov 128   ;;  %s1869_s15 = smov 8  }
  0x5f   : > { %1581 = dma.hbm_to_vmem [thread:$0]  (!%p2041_p11), %s2037_s10, 256, %s2039_s28, %s2045_s13, %s1868_s14, %s1868_s14, %s1869_s15  }
  0x60   : > { %231 = sbr.rel (%p1944_p8) target bundleno = 912 (0x390), region = 40  ;;  %s2076_s17 = sand.u32 (!%p1944_p8), 1, %s1851_s19  }
  0x61   : > { %s1398_s23 = sshll.u32 (!%p1944_p8), %s2076_s17, 4  ;;  %s234_s7 = scalar_lea.sflag (!%p1944_p8), [#allocation3], %s2076_s17 }
  0x62   : > { %s237_s6 = scalar_lea.vmem (!%p1944_p8), [#allocation2], %s1398_s23  ;;  %p2180_p4 = scmp.ne.s32.totalorder (!%p1944_p8), %s2173_s24, 0 }
  0x67   : > { %1834 = dma.done.wait (%p2180_p4), %s234_s7, 256  }
  0x68   : > { %1836 = vsyncadd (%p2180_p4), %s234_s7, 4294967040  ;;  %p2181_p7 = scmp.eq.s32.totalorder %s1925_s22, 0 }
  0x6a   : > { %1838 = dma.done.wait (%p2181_p7), [#allocation6], 12288   ;;  %p2182_p8 = pmov %p2181_p7 }
  0x6b   : > { %v275_v0 = vld [vmem:[%s237_s6] sm:$0xff]  ;;  %v276_v1 = vld [vmem:[%s237_s6 + $0x8] sm:$0xff]  ;;  %s271_s12 = scalar_lea.vmem [#allocation8], %s1398_s23  ;;  %s1514_s29 = sshll.u32 %s1925_s22, 8 }
  0x6c   : > { %1840 = vsyncadd (%p2182_p8), [#allocation6], 4294955008  ;;  %277 = vadd.xlane.f32.xlu0 %v275_v0  ;;  %v319_v2 = vld [vmem:[#allocation5] sm:$0xff]  ;;  %v320_v4 = vld [vmem:[#allocation5 + $0x8] sm:$0xff]  ;;  %s1297_s13 = sshll.u32 %s271_s12, 4  ;;  %s2120_s11 = scalar_lea.hbm %s2169_s5, %s1514_s29  ;;  %s2115_s13 = int_to_ptr.vmem [resolvable:$true] %s1297_s13 }
  0x6d   : > { %v323_v3 = vld [vmem:[#allocation5 + $0x20] sm:$0xff]  ;;  %v324_v6 = vld [vmem:[#allocation5 + $0x28] sm:$0xff]  ;;  %s1284_s14 = scalar_lea.sflag [#allocation4], %s2076_s17  ;;  %s1789_s22 = scalar_lea.vmem %s2115_s13, 256 }
  0x6e   : > { %v1405_v5 = vcombine.high %v319_v2, %v323_v3  ;;  %v1404_v7 = vcombine.low %v319_v2, %v323_v3  ;;  %v327_v8 = vld [vmem:[#allocation5 + $0x40] sm:$0xff]  ;;  %v1407_v10 = vcombine.high %v320_v4, %v324_v6  ;;  %v1406_v11 = vcombine.low %v320_v4, %v324_v6  ;;  %v328_v13 = vld [vmem:[#allocation5 + $0x48] sm:$0xff]  ;;  %p1790_p11 = scmp.ne.s32.totalorder %s2115_s13, %s1789_s22  ;;  %p2183_p0 = scmp.ne.s32.totalorder %s2178_s30, 0 }
  0x6f   : > { %v331_v9 = vld [vmem:[#allocation5 + $0x60] sm:$0xff]  ;;  %v332_v14 = vld [vmem:[#allocation5 + $0x68] sm:$0xff]  ;;  %s1871_s15 = smov [#allocation8]  }
  0x70   : > { %279 = vadd.xlane.f32.xlu0 %v276_v1  ;;  %v1413_v12 = vcombine.high %v327_v8, %v331_v9  ;;  %703 = vmatprep.subr.bf16.mxu0 %v1405_v5  ;;  %v1415_v15 = vcombine.high %v328_v13, %v332_v14  ;;  %v1412_v16 = vcombine.low %v327_v8, %v331_v9  ;;  %v335_v26 = vld [vmem:[#allocation5 + $0x80] sm:$0xff]  ;;  %v336_v28 = vld [vmem:[#allocation5 + $0x88] sm:$0xff]  ;;  %v1870_v8 = vmov 0   ;;  %v321_v9 = vld [vmem:[#allocation5 + $0x10] sm:$0xff]  ;;  %p1791_p1 = pnand %p1790_p11, %p2183_p0  ;;  %s1793_s23 = sshll.u32 %s1871_s15, 4  ;;  %s1794_s23 = int_to_ptr.vmem [resolvable:$false] %s1793_s23 }
  0x71   : > { %746 = vmatprep.subr.bf16.mxu1 %v1407_v10  ;;  %704 = vmatpush1.bf16.msra.mxu0 %v1404_v7  ;;  %v1414_v17 = vcombine.low %v328_v13, %v332_v14  ;;  %v339_v27 = vld [vmem:[#allocation5 + $0xa0] sm:$0xff]  ;;  %v340_v30 = vld [vmem:[#allocation5 + $0xa8] sm:$0xff]  ;;  %v325_v10 = vld [vmem:[#allocation5 + $0x30] sm:$0xff]  ;;  %s1795_s7 = scalar_lea.vmem %s1794_s23, 512  ;;  %p1796_p5 = scmp.lt.s32.totalorder %s2115_s13, %s1794_s23 }
  0x72   : > { %747 = vmatpush1.bf16.msra.mxu1 %v1406_v11  ;;  %705 = vmatprep.subr.bf16.mxu0 %v1413_v12  ;;  %v1421_v29 = vcombine.high %v335_v26, %v339_v27  ;;  %v1423_v31 = vcombine.high %v336_v28, %v340_v30  ;;  %v1420_v32 = vcombine.low %v335_v26, %v339_v27  ;;  %v343_v34 = vld [vmem:[#allocation5 + $0xc0] sm:$0xff]  ;;  %v344_v36 = vld [vmem:[#allocation5 + $0xc8] sm:$0xff]  ;;  %p1792_p3 = pneg %p1791_p1  ;;  %p1797_p9 = scmp.lt.s32.totalorder %s1795_s7, %s1789_s22 }
  0x73   : > { %748 = vmatprep.subr.bf16.mxu1 %v1415_v15  ;;  %v1422_v33 = vcombine.low %v336_v28, %v340_v30  ;;  %v347_v35 = vld [vmem:[#allocation5 + $0xe0] sm:$0xff]  ;;  %v348_v38 = vld [vmem:[#allocation5 + $0xe8] sm:$0xff]  ;;  %735 = vmatprep.mubr.bf16.mxu0 %v1870_v8  ;;  %v1408_v13 = vcombine.low %v321_v9, %v325_v10  ;;  %v1409_v14 = vcombine.high %v321_v9, %v325_v10  ;;  %v322_v15 = vld [vmem:[#allocation5 + $0x18] sm:$0xff] }
  0x74   : > { %v1429_v37 = vcombine.high %v343_v34, %v347_v35  ;;  %v1431_v39 = vcombine.high %v344_v36, %v348_v38  ;;  %v1428_v40 = vcombine.low %v343_v34, %v347_v35  ;;  %v1430_v41 = vcombine.low %v344_v36, %v348_v38  ;;  %v351_v42 = vld [vmem:[#allocation5 + $0x100] sm:$0xff]  ;;  %v352_v44 = vld [vmem:[#allocation5 + $0x108] sm:$0xff]  ;;  %778 = vmatprep.mubr.bf16.mxu1 %v1870_v8  ;;  %v329_v35 = vld [vmem:[#allocation5 + $0x50] sm:$0xff]  ;;  %p1798_p12 = por %p1797_p9, %p1796_p5 }
  0x75   : > { %706 = vmatpush1.bf16.msra.mxu0 %v1412_v16  ;;  %v355_v43 = vld [vmem:[#allocation5 + $0x120] sm:$0xff]  ;;  %v356_v46 = vld [vmem:[#allocation5 + $0x128] sm:$0xff]  ;;  %v326_v16 = vld [vmem:[#allocation5 + $0x38] sm:$0xff] }
  0x76   : > { %749 = vmatpush1.bf16.msra.mxu1 %v1414_v17  ;;  %707 = vmatprep.subr.bf16.mxu0 %v1421_v29  ;;  %v1437_v45 = vcombine.high %v351_v42, %v355_v43  ;;  %v1439_v47 = vcombine.high %v352_v44, %v356_v46  ;;  %v1436_v48 = vcombine.low %v351_v42, %v355_v43  ;;  %v359_v50 = vld [vmem:[#allocation5 + $0x140] sm:$0xff]  ;;  %v360_v52 = vld [vmem:[#allocation5 + $0x148] sm:$0xff]  ;;  %v333_v36 = vld [vmem:[#allocation5 + $0x70] sm:$0xff]  ;;  %p1799_p2 = pnand %p1798_p12, %p1792_p3 }
  0x77   : > { %750 = vmatprep.subr.bf16.mxu1 %v1423_v31  ;;  %v1438_v49 = vcombine.low %v352_v44, %v356_v46  ;;  %v363_v51 = vld [vmem:[#allocation5 + $0x160] sm:$0xff]  ;;  %v364_v54 = vld [vmem:[#allocation5 + $0x168] sm:$0xff]  ;;  %v1410_v17 = vcombine.low %v322_v15, %v326_v16  ;;  %v334_v38 = vld [vmem:[#allocation5 + $0x78] sm:$0xff]  ;;  %v1416_v46 = vcombine.low %v329_v35, %v333_v36 }
  0x78   : > { %v1445_v53 = vcombine.high %v359_v50, %v363_v51  ;;  %v1447_v55 = vcombine.high %v360_v52, %v364_v54  ;;  %v1444_v56 = vcombine.low %v359_v50, %v363_v51  ;;  %v1446_v57 = vcombine.low %v360_v52, %v364_v54  ;;  %v367_v58 = vld [vmem:[#allocation5 + $0x180] sm:$0xff]  ;;  %v368_v60 = vld [vmem:[#allocation5 + $0x188] sm:$0xff]  ;;  %v337_v43 = vld [vmem:[#allocation5 + $0x90] sm:$0xff] }
  0x79   : > { %708 = vmatpush1.bf16.msra.mxu0 %v1420_v32  ;;  %v371_v59 = vld [vmem:[#allocation5 + $0x1a0] sm:$0xff]  ;;  %v372_v62 = vld [vmem:[#allocation5 + $0x1a8] sm:$0xff]  ;;  %v341_v44 = vld [vmem:[#allocation5 + $0xb0] sm:$0xff] }
  0x7a   : > { %751 = vmatpush1.bf16.msra.mxu1 %v1422_v33  ;;  %709 = vmatprep.subr.bf16.mxu0 %v1429_v37  ;;  %v1453_v61 = vcombine.high %v367_v58, %v371_v59  ;;  %v1455_v63 = vcombine.high %v368_v60, %v372_v62  ;;  %v375_v2 = vld [vmem:[#allocation5 + $0x1c0] sm:$0xff]  ;;  %v376_v4 = vld [vmem:[#allocation5 + $0x1c8] sm:$0xff]  ;;  %v330_v37 = vld [vmem:[#allocation5 + $0x58] sm:$0xff]  ;;  %v1424_v54 = vcombine.low %v337_v43, %v341_v44 }
  0x7b   : > { %752 = vmatprep.subr.bf16.mxu1 %v1431_v39  ;;  %v379_v3 = vld [vmem:[#allocation5 + $0x1e0] sm:$0xff]  ;;  %v380_v6 = vld [vmem:[#allocation5 + $0x1e8] sm:$0xff]  ;;  %v1419_v42 = vcombine.high %v330_v37, %v334_v38  ;;  %v345_v50 = vld [vmem:[#allocation5 + $0xd0] sm:$0xff] }
  0x7c   : > { %v1461_v5 = vcombine.high %v375_v2, %v379_v3  ;;  %v1460_v7 = vcombine.low %v375_v2, %v379_v3  ;;  %v1463_v11 = vcombine.high %v376_v4, %v380_v6  ;;  %v1462_v12 = vcombine.low %v376_v4, %v380_v6  ;;  %v1402_v29 = vld [vmem:[%s2165_s1] ss:$0 sm:$0xff]  ;;  %v349_v51 = vld [vmem:[#allocation5 + $0xf0] sm:$0xff]  ;;  %v346_v52 = vld [vmem:[#allocation5 + $0xd8] sm:$0xff] }
  0x7d   : > { %710 = vmatpush1.bf16.msra.mxu0 %v1428_v40  ;;  %v1403_v33 = vld [vmem:[%s2166_s2] ss:$0 sm:$0xff]  ;;  %v361_v2 = vld [vmem:[#allocation5 + $0x150] sm:$0xff]  ;;  %v362_v4 = vld [vmem:[#allocation5 + $0x158] sm:$0xff] }
  0x7e   : > { %753 = vmatpush1.bf16.msra.mxu1 %v1430_v41  ;;  %711 = vmatprep.subr.bf16.mxu0 %v1437_v45  ;;  %v1417_v41 = vcombine.high %v329_v35, %v333_v36  ;;  %v338_v45 = vld [vmem:[#allocation5 + $0x98] sm:$0xff]  ;;  %v365_v3 = vld [vmem:[#allocation5 + $0x170] sm:$0xff]  ;;  %v1640_v35 = vld [vmem:[#allocation7 + $0xc8] sm:$0xff]  }
  0x7f   : > { %754 = vmatprep.subr.bf16.mxu1 %v1439_v47  ;;  %v1418_v47 = vcombine.low %v330_v37, %v334_v38  ;;  %v369_v10 = vld [vmem:[#allocation5 + $0x190] sm:$0xff]  ;;  %v1641_v36 = vld [vmem:[#allocation7 + $0x8] sm:$0xff]  }
  0x80   : > { %v1642_v37 = vld [vmem:[#allocation7 + $0x88] sm:$0xff]   ;;  %v1643_v38 = vld [vmem:[#allocation7 + $0x50] sm:$0xff]  }
  0x81   : > { %712 = vmatpush1.bf16.msra.mxu0 %v1436_v48  ;;  %v1425_v48 = vcombine.high %v337_v43, %v341_v44  ;;  %v1649_v43 = vld [vmem:[#allocation7 + $0x18] sm:$0xff]  }
  0x82   : > { %755 = vmatpush1.bf16.msra.mxu1 %v1438_v49  ;;  %713 = vmatprep.subr.bf16.mxu0 %v1445_v53  ;;  %v350_v53 = vld [vmem:[#allocation5 + $0xf8] sm:$0xff] }
  0x83   : > { %756 = vmatprep.subr.bf16.mxu1 %v1447_v55  ;;  %v1650_v44 = vld [vmem:[#allocation7 + $0x98] sm:$0xff]  }
  0x85   : > { %714 = vmatpush1.bf16.msra.mxu0 %v1444_v56  ;;  %v1433_v56 = vcombine.high %v345_v50, %v349_v51 }
  0x86   : > { %757 = vmatpush1.bf16.msra.mxu1 %v1446_v57  ;;  %715 = vmatprep.subr.bf16.mxu0 %v1453_v61  ;;  %v1435_v57 = vcombine.high %v346_v52, %v350_v53  ;;  %v358_v61 = vld [vmem:[#allocation5 + $0x138] sm:$0xff] }
  0x87   : > { %758 = vmatprep.subr.bf16.mxu1 %v1455_v63  ;;  %v1434_v63 = vcombine.low %v346_v52, %v350_v53  ;;  %v1659_v52 = vld [vmem:[#allocation7 + $0x70] sm:$0xff]  }
  0x88   : > { %v1660_v53 = vld [vmem:[#allocation7 + $0xf0] sm:$0xff]  }
  0xf9   : > { %v278_v18 = vpop.xlane.xlu0 %277 }
  0xfa   : > { %v282_v19 = vmul.f32 0.0078125, %v278_v18  ;;  %v1411_v18 = vcombine.high %v322_v15, %v326_v16 }
  0xfc   : > { %v2090_v20 = vsub.f32 %v275_v0, %v282_v19  ;;  %v1452_v0 = vcombine.low %v367_v58, %v371_v59  ;;  %v353_v58 = vld [vmem:[#allocation5 + $0x110] sm:$0xff] }
  0xfd   : > { %v280_v21 = vpop.xlane.xlu0 %279  ;;  %v357_v59 = vld [vmem:[#allocation5 + $0x130] sm:$0xff] }
  0xfe   : > { %v283_v22 = vmul.f32 0.0078125, %v280_v21  ;;  %v286_v23 = vmul.f32 %v2090_v20, %v2090_v20  ;;  %716 = vmatpush1.bf16.msra.mxu0 %v1452_v0  ;;  %v1441_v0 = vcombine.high %v353_v58, %v357_v59  ;;  %v1440_v6 = vcombine.low %v353_v58, %v357_v59  ;;  %v1665_v58 = vld [vmem:[#allocation7 + $0x38] sm:$0xff]  }
  0xff   : > { %717 = vmatprep.subr.bf16.mxu0 %v1461_v5  ;;  %v366_v5 = vld [vmem:[#allocation5 + $0x178] sm:$0xff] }
 0x100   : > { %v2094_v24 = vsub.f32 %v276_v1, %v283_v22  ;;  %288 = vadd.xlane.f32.xlu1 %v286_v23  ;;  %v1454_v1 = vcombine.low %v368_v60, %v372_v62  ;;  %v354_v60 = vld [vmem:[#allocation5 + $0x118] sm:$0xff]  ;;  %v1432_v62 = vcombine.low %v345_v50, %v349_v51  ;;  %v1451_v9 = vcombine.high %v362_v4, %v366_v5  ;;  %v1657_v50 = vld [vmem:[#allocation7 + $0x28] sm:$0xff]  }
 0x101   : > { %v1450_v15 = vcombine.low %v362_v4, %v366_v5  ;;  %v1658_v51 = vld [vmem:[#allocation7 + $0xa8] sm:$0xff]   ;;  %v1666_v59 = vld [vmem:[#allocation7 + $0xb8] sm:$0xff]  }
 0x102   : > { %v287_v25 = vmul.f32 %v2094_v24, %v2094_v24  ;;  %759 = vmatpush1.bf16.msra.mxu1 %v1454_v1  ;;  %718 = vmatpush1.bf16.msra.mxu0 %v1460_v7  ;;  %v1443_v1 = vcombine.high %v354_v60, %v358_v61  ;;  %v1442_v7 = vcombine.low %v354_v60, %v358_v61 }
 0x103   : > { %760 = vmatprep.subr.bf16.mxu1 %v1463_v11  ;;  %789 = vmatprep.subr.bf16.mxu0 %v1409_v14  ;;  %v373_v11 = vld [vmem:[#allocation5 + $0x1b0] sm:$0xff]  ;;  %v1448_v14 = vcombine.low %v361_v2, %v365_v3 }
 0x104   : > { %290 = vadd.xlane.f32.xlu1 %v287_v25  ;;  %v1457_v16 = vcombine.high %v369_v10, %v373_v11 }
 0x106   : > { %761 = vmatpush1.bf16.msra.mxu1 %v1462_v12  ;;  %v370_v12 = vld [vmem:[#allocation5 + $0x198] sm:$0xff] }
 0x107   : > { %832 = vmatprep.subr.bf16.mxu1 %v1411_v18  ;;  %v377_v18 = vld [vmem:[#allocation5 + $0x1d0] sm:$0xff] }
 0x18d   : > { %v289_v19 = vpop.xlane.xlu1 %288 }
 0x18e   : > { %v292_v21 = vmul.f32 0.0078125, %v289_v19  ;;  %v381_v19 = vld [vmem:[#allocation5 + $0x1f0] sm:$0xff] }
 0x190   : > { %v294_v22 = vadd.f32 1e-05, %v292_v21  ;;  %v378_v21 = vld [vmem:[#allocation5 + $0x1d8] sm:$0xff] }
 0x191   : > { %v291_v23 = vpop.xlane.xlu1 %290 }
 0x192   : > { %1667 = vrsqrt.f32 %v294_v22  ;;  %v293_v25 = vmul.f32 0.0078125, %v291_v23  ;;  %v382_v22 = vld [vmem:[#allocation5 + $0x1f8] sm:$0xff]  ;;  %v1456_v23 = vcombine.low %v369_v10, %v373_v11 }
 0x194   : > { %v295_v26 = vadd.f32 1e-05, %v293_v25 }
 0x196   : > { %1669 = vrsqrt.f32 %v295_v26  ;;  %v1465_v26 = vcombine.high %v377_v18, %v381_v19 }
 0x19c   : > { %v1668_v27 = vpop.eup %1667 }
 0x19d   : > { %v298_v28 = vmul.f32 %v1668_v27, %v2090_v20  ;;  %v1467_v27 = vcombine.high %v378_v21, %v382_v22 }
 0x19f   : > { %v307_v32 = vmul.f32 %v1402_v29, %v298_v28  ;;  %v1464_v28 = vcombine.low %v377_v18, %v381_v19 }
 0x1a0   : > { %v1670_v30 = vpop.eup %1669 }
 0x1a1   : > { %v299_v31 = vmul.f32 %v1670_v30, %v2094_v24  ;;  %v316_v39 = vadd.f32 %v1403_v33, %v307_v32  ;;  %v342_v24 = vld [vmem:[#allocation5 + $0xb8] sm:$0xff]  ;;  %v1635_v30 = vld [vmem:[#allocation7 + $0x40] sm:$0xff]  }
 0x1a2   : > { %v1427_v49 = vcombine.high %v338_v45, %v342_v24  ;;  %v1426_v55 = vcombine.low %v338_v45, %v342_v24  ;;  %v1637_v32 = vld [vmem:[#allocation7] sm:$0xff]  }
 0x1a3   : > { %v308_v34 = vmul.f32 %v1402_v29, %v299_v31  ;;  %v1466_v29 = vcombine.low %v378_v21, %v382_v22  ;;  %v1636_v31 = vld [vmem:[#allocation7 + $0xc0] sm:$0xff]  }
 0x1a4   : > { %v1651_v45 = vld [vmem:[#allocation7 + $0x60] sm:$0xff]  }
 0x1a5   : > { %v317_v40 = vadd.f32 %v1403_v33, %v308_v34  ;;  %v1638_v33 = vld [vmem:[#allocation7 + $0x80] sm:$0xff]   ;;  %v1639_v34 = vld [vmem:[#allocation7 + $0x48] sm:$0xff]  }
 0x1a6   : > { %v1652_v24 = vld [vmem:[#allocation7 + $0xe0] sm:$0xff]  }
 0x1a7   : > { %v2106_v20 = vpack.c.bf16 %v317_v40, %v316_v39  ;;  %v1644_v39 = vld [vmem:[#allocation7 + $0xd0] sm:$0xff]  }
 0x1a8   : > { %v1645_v40 = vld [vmem:[#allocation7 + $0x10] sm:$0xff]  }
 0x1a9   : > { %736 = vmatmul.mubr.bf16.vlgmr.msra.gmra.mrb[0].mxu0 %v2106_v20  ;;  %779 = vmatmul.mubr.bf16.vlgmr.msra.gmra.mrb[0].mxu1 %v2106_v20 }
 0x1aa   : > { %790 = vmatpush1.bf16.msra.mxu0 %v1408_v13  ;;  %833 = vmatpush1.bf16.msra.mxu1 %v1410_v17  ;;  %v374_v13 = vld [vmem:[#allocation5 + $0x1b8] sm:$0xff] }
 0x1ab   : > { %791 = vmatprep.subr.bf16.mxu0 %v1417_v41  ;;  %834 = vmatprep.subr.bf16.mxu1 %v1419_v42  ;;  %v1459_v17 = vcombine.high %v370_v12, %v374_v13  ;;  %v1458_v25 = vcombine.low %v370_v12, %v374_v13  ;;  %v1647_v41 = vld [vmem:[#allocation7 + $0x58] sm:$0xff]  }
 0x1ac   : > { %821 = vmatprep.mubr.bf16.mxu0 %v1870_v8  ;;  %864 = vmatprep.mubr.bf16.mxu1 %v1870_v8  ;;  %v1449_v8 = vcombine.high %v361_v2, %v365_v3  ;;  %v1648_v42 = vld [vmem:[#allocation7 + $0xd8] sm:$0xff]  }
 0x1ae   : > { %792 = vmatpush1.bf16.msra.mxu0 %v1416_v46  ;;  %835 = vmatpush1.bf16.msra.mxu1 %v1418_v47  ;;  %v1653_v46 = vld [vmem:[#allocation7 + $0x20] sm:$0xff]  }
 0x1af   : > { %793 = vmatprep.subr.bf16.mxu0 %v1425_v48  ;;  %836 = vmatprep.subr.bf16.mxu1 %v1427_v49  ;;  %v1654_v47 = vld [vmem:[#allocation7 + $0xa0] sm:$0xff]   ;;  %v1655_v48 = vld [vmem:[#allocation7 + $0x68] sm:$0xff]  }
 0x1b0   : > { %v1656_v49 = vld [vmem:[#allocation7 + $0xe8] sm:$0xff]  }
 0x1b2   : > { %794 = vmatpush1.bf16.msra.mxu0 %v1424_v54  ;;  %837 = vmatpush1.bf16.msra.mxu1 %v1426_v55  ;;  %v1661_v54 = vld [vmem:[#allocation7 + $0x30] sm:$0xff]  }
 0x1b3   : > { %795 = vmatprep.subr.bf16.mxu0 %v1433_v56  ;;  %838 = vmatprep.subr.bf16.mxu1 %v1435_v57  ;;  %v1662_v55 = vld [vmem:[#allocation7 + $0xb0] sm:$0xff]   ;;  %v1663_v56 = vld [vmem:[#allocation7 + $0x78] sm:$0xff]  }
 0x1b4   : > { %v1664_v57 = vld [vmem:[#allocation7 + $0xf8] sm:$0xff]  }
 0x1b6   : > { %796 = vmatpush1.bf16.msra.mxu0 %v1432_v62  ;;  %839 = vmatpush1.bf16.msra.mxu1 %v1434_v63 }
 0x1b7   : > { %797 = vmatprep.subr.bf16.mxu0 %v1441_v0  ;;  %840 = vmatprep.subr.bf16.mxu1 %v1443_v1 }
 0x1ba   : > { %798 = vmatpush1.bf16.msra.mxu0 %v1440_v6  ;;  %841 = vmatpush1.bf16.msra.mxu1 %v1442_v7 }
 0x1bb   : > { %799 = vmatprep.subr.bf16.mxu0 %v1449_v8  ;;  %842 = vmatprep.subr.bf16.mxu1 %v1451_v9 }
 0x1be   : > { %800 = vmatpush1.bf16.msra.mxu0 %v1448_v14  ;;  %843 = vmatpush1.bf16.msra.mxu1 %v1450_v15 }
 0x1bf   : > { %801 = vmatprep.subr.bf16.mxu0 %v1457_v16  ;;  %844 = vmatprep.subr.bf16.mxu1 %v1459_v17 }
 0x1c2   : > { %802 = vmatpush1.bf16.msra.mxu0 %v1456_v23  ;;  %845 = vmatpush1.bf16.msra.mxu1 %v1458_v25 }
 0x1c3   : > { %803 = vmatprep.subr.bf16.mxu0 %v1465_v26  ;;  %846 = vmatprep.subr.bf16.mxu1 %v1467_v27 }
 0x1c6   : > { %804 = vmatpush1.bf16.msra.mxu0 %v1464_v28  ;;  %847 = vmatpush1.bf16.msra.mxu1 %v1466_v29 }
 0x1c7   : > { %1515 = vmatprep.subr.bf16.mxu0 %v1635_v30  ;;  %1537 = vmatprep.subr.bf16.mxu1 %v1636_v31 }
 0x1c9   : > { %822 = vmatmul.mubr.bf16.vlgmr.msra.gmra.mrb[4].mxu0 %v2106_v20  ;;  %865 = vmatmul.mubr.bf16.vlgmr.msra.gmra.mrb[4].mxu1 %v2106_v20  ;;  %v1646_v20 = vld [vmem:[#allocation7 + $0x90] sm:$0xff]  }
 0x1ca   : > { %1516 = vmatpush3.bf16.msra.mxu0 %v1637_v32  ;;  %1538 = vmatpush3.bf16.msra.mxu1 %v1638_v33 }
 0x1cb   : > { %1517 = vmatprep.subr.bf16.mxu0 %v1639_v34  ;;  %1539 = vmatprep.subr.bf16.mxu1 %v1640_v35 }
 0x1ce   : > { %1518 = vmatpush3.bf16.msra.mxu0 %v1641_v36  ;;  %1540 = vmatpush3.bf16.msra.mxu1 %v1642_v37 }
 0x1cf   : > { %1519 = vmatprep.subr.bf16.mxu0 %v1643_v38  ;;  %1541 = vmatprep.subr.bf16.mxu1 %v1644_v39 }
 0x1d2   : > { %1520 = vmatpush3.bf16.msra.mxu0 %v1645_v40  ;;  %1542 = vmatpush3.bf16.msra.mxu1 %v1646_v20 }
 0x1d3   : > { %1521 = vmatprep.subr.bf16.mxu0 %v1647_v41  ;;  %1543 = vmatprep.subr.bf16.mxu1 %v1648_v42 }
 0x1d6   : > { %1522 = vmatpush3.bf16.msra.mxu0 %v1649_v43  ;;  %1544 = vmatpush3.bf16.msra.mxu1 %v1650_v44 }
 0x1d7   : > { %1523 = vmatprep.subr.bf16.mxu0 %v1651_v45  ;;  %1545 = vmatprep.subr.bf16.mxu1 %v1652_v24 }
 0x1da   : > { %1524 = vmatpush3.bf16.msra.mxu0 %v1653_v46  ;;  %1546 = vmatpush3.bf16.msra.mxu1 %v1654_v47 }
 0x1db   : > { %1525 = vmatprep.subr.bf16.mxu0 %v1655_v48  ;;  %1547 = vmatprep.subr.bf16.mxu1 %v1656_v49 }
 0x1de   : > { %1526 = vmatpush3.bf16.msra.mxu0 %v1657_v50  ;;  %1548 = vmatpush3.bf16.msra.mxu1 %v1658_v51 }
 0x1df   : > { %1527 = vmatprep.subr.bf16.mxu0 %v1659_v52  ;;  %1549 = vmatprep.subr.bf16.mxu1 %v1660_v53 }
 0x1e2   : > { %1528 = vmatpush3.bf16.msra.mxu0 %v1661_v54  ;;  %1550 = vmatpush3.bf16.msra.mxu1 %v1662_v55 }
 0x1e3   : > { %1529 = vmatprep.subr.bf16.mxu0 %v1663_v56  ;;  %1551 = vmatprep.subr.bf16.mxu1 %v1664_v57 }
 0x1e6   : > { %1530 = vmatpush3.bf16.msra.mxu0 %v1665_v58  ;;  %1552 = vmatpush3.bf16.msra.mxu1 %v1666_v59 }
 0x27c   : > { %v737_v60 = vpop.f32.mrb[0].mxu0  ;;  %v780_v61 = vpop.f32.mrb[0].mxu1 }
 0x27d   : > { %v1468_v62 = vmul.f32 -1.442695, %v737_v60  ;;  %v1470_v63 = vmul.f32 -1.442695, %v780_v61  ;;  %v739_v0 = vpop.f32.mrb[1].mxu0  ;;  %v782_v1 = vpop.f32.mrb[1].mxu1 }
 0x27e   : > { %v1469_v2 = vmul.f32 -1.442695, %v739_v0  ;;  %v1471_v3 = vmul.f32 -1.442695, %v782_v1  ;;  %v741_v4 = vpop.f32.mrb[2].mxu0  ;;  %v784_v5 = vpop.f32.mrb[2].mxu1 }
 0x27f   : > { %1671 = vpow2.f32 %v1468_v62  ;;  %v1472_v6 = vmul.f32 -1.442695, %v741_v4  ;;  %v743_v7 = vpop.f32.mrb[3].mxu0  ;;  %v786_v8 = vpop.f32.mrb[3].mxu1  ;;  %v1474_v9 = vmul.f32 -1.442695, %v784_v5 }
 0x280   : > { %1673 = vpow2.f32 %v1470_v63  ;;  %v1473_v10 = vmul.f32 -1.442695, %v743_v7  ;;  %v1475_v11 = vmul.f32 -1.442695, %v786_v8 }
 0x281   : > { %1675 = vpow2.f32 %v1469_v2 }
 0x282   : > { %1677 = vpow2.f32 %v1471_v3 }
 0x283   : > { %1679 = vpow2.f32 %v1472_v6 }
 0x284   : > { %1681 = vpow2.f32 %v1474_v9 }
 0x285   : > { %1683 = vpow2.f32 %v1473_v10 }
 0x286   : > { %1685 = vpow2.f32 %v1475_v11 }
 0x289   : > { %v1672_v12 = vpop.eup %1671 }
 0x28a   : > { %v1674_v13 = vpop.eup %1673  ;;  %v899_v14 = vadd.f32 1.0, %v1672_v12 }
 0x28b   : > { %v1676_v15 = vpop.eup %1675  ;;  %v901_v16 = vadd.f32 1.0, %v1674_v13 }
 0x28c   : > { %v1678_v17 = vpop.eup %1677  ;;  %1687 = vrcp.f32 %v899_v14  ;;  %v900_v18 = vadd.f32 1.0, %v1676_v15 }
 0x28d   : > { %v1680_v19 = vpop.eup %1679  ;;  %1689 = vrcp.f32 %v901_v16  ;;  %v902_v21 = vadd.f32 1.0, %v1678_v17 }
 0x28e   : > { %v1682_v22 = vpop.eup %1681  ;;  %1691 = vrcp.f32 %v900_v18  ;;  %v903_v23 = vadd.f32 1.0, %v1680_v19 }
 0x28f   : > { %v1684_v25 = vpop.eup %1683  ;;  %1693 = vrcp.f32 %v902_v21  ;;  %v905_v26 = vadd.f32 1.0, %v1682_v22 }
 0x290   : > { %v1686_v27 = vpop.eup %1685  ;;  %1695 = vrcp.f32 %v903_v23  ;;  %v904_v28 = vadd.f32 1.0, %v1684_v25 }
 0x291   : > { %1697 = vrcp.f32 %v905_v26  ;;  %v906_v29 = vadd.f32 1.0, %v1686_v27 }
 0x292   : > { %1699 = vrcp.f32 %v904_v28 }
 0x293   : > { %1701 = vrcp.f32 %v906_v29 }
 0x296   : > { %v1688_v30 = vpop.eup %1687 }
 0x297   : > { %v1690_v31 = vpop.eup %1689  ;;  %v923_v36 = vmul.f32 %v1688_v30, %v737_v60 }
 0x298   : > { %v1692_v32 = vpop.eup %1691  ;;  %v925_v37 = vmul.f32 %v1690_v31, %v780_v61 }
 0x299   : > { %v1694_v33 = vpop.eup %1693  ;;  %v924_v39 = vmul.f32 %v1692_v32, %v739_v0 }
 0x29a   : > { %v1696_v34 = vpop.eup %1695  ;;  %v926_v40 = vmul.f32 %v1694_v33, %v782_v1 }
 0x29b   : > { %v1698_v35 = vpop.eup %1697  ;;  %v927_v43 = vmul.f32 %v1696_v34, %v741_v4 }
 0x29c   : > { %v1700_v38 = vpop.eup %1699  ;;  %v823_v20 = vpop.f32.mrb[4].mxu0  ;;  %v929_v44 = vmul.f32 %v1698_v35, %v784_v5 }
 0x29d   : > { %v866_v41 = vpop.f32.mrb[4].mxu1  ;;  %v1702_v42 = vpop.eup %1701  ;;  %v931_v45 = vmul.f32 %v923_v36, %v823_v20  ;;  %v928_v48 = vmul.f32 %v1700_v38, %v743_v7 }
 0x29e   : > { %v933_v24 = vmul.f32 %v925_v37, %v866_v41  ;;  %v825_v46 = vpop.f32.mrb[5].mxu0  ;;  %v868_v47 = vpop.f32.mrb[5].mxu1  ;;  %v930_v49 = vmul.f32 %v1702_v42, %v786_v8 }
 0x29f   : > { %v932_v50 = vmul.f32 %v924_v39, %v825_v46  ;;  %v934_v51 = vmul.f32 %v926_v40, %v868_v47  ;;  %v827_v52 = vpop.f32.mrb[6].mxu0  ;;  %v870_v53 = vpop.f32.mrb[6].mxu1 }
 0x2a0   : > { %v935_v54 = vmul.f32 %v927_v43, %v827_v52  ;;  %v937_v55 = vmul.f32 %v929_v44, %v870_v53  ;;  %v829_v56 = vpop.f32.mrb[7].mxu0  ;;  %v872_v57 = vpop.f32.mrb[7].mxu1 }
 0x2a1   : > { %v936_v58 = vmul.f32 %v928_v48, %v829_v56  ;;  %v938_v59 = vmul.f32 %v930_v49, %v872_v57 }
 0x2a2   : > { %v939_v60 = vpack.c.bf16 %v935_v54, %v931_v45  ;;  %v941_v61 = vpack.c.bf16 %v937_v55, %v933_v24 }
 0x2a3   : > { %v940_v62 = vpack.c.bf16 %v936_v58, %v932_v50  ;;  %v942_v63 = vpack.c.bf16 %v938_v59, %v934_v51 }
 0x2a5   : > { %1231 = vmatprep.mubr.bf16.mxu0 %v940_v62  ;;  %1272 = vmatprep.mubr.bf16.mxu1 %v942_v63 }
 0x2a6   : > { %1232 = vmatmul.mubr.bf16.vlgmr.msra.gmra.mrb[8].mxu0 %v939_v60  ;;  %1273 = vmatmul.mubr.bf16.vlgmr.msra.gmra.mrb[8].mxu1 %v941_v61 }
 0x379   : > { %v1531_v0 = vpop.f32.mrb[8].mxu0  ;;  %v1553_v1 = vpop.f32.mrb[8].mxu1 }
 0x37a   : > { %v1532_v2 = vpop.f32.mrb[9].mxu0  ;;  %v1554_v3 = vpop.f32.mrb[9].mxu1 }
 0x37b   : > { %v1533_v4 = vadd.f32 %v1532_v2, %v1531_v0  ;;  %v1555_v5 = vadd.f32 %v1554_v3, %v1553_v1  ;;  %v1534_v6 = vpop.f32.mrb[10].mxu0  ;;  %v1556_v7 = vpop.f32.mrb[10].mxu1 }
 0x37c   : > { %v1535_v8 = vpop.f32.mrb[11].mxu0  ;;  %v1557_v9 = vpop.f32.mrb[11].mxu1 }
 0x37d   : > { %v1275_v10 = vadd.f32 %v1555_v5, %v1533_v4  ;;  %v1536_v11 = vadd.f32 %v1535_v8, %v1534_v6  ;;  %v1558_v12 = vadd.f32 %v1557_v9, %v1556_v7 }
 0x37f   : > { %1281 = vst [vmem:[%s271_s12] sm:$0xff] %v1275_v10  ;;  %v1278_v13 = vadd.f32 %v1558_v12, %v1536_v11 }
 0x381   : > { %1282 = vst [vmem:[%s271_s12 + $0x8] sm:$0xff] %v1278_v13 }
 0x382   : > { %1802 = shalt.err (!%p1799_p2)
}
 0x383   : > { %s1803_s6 = scalar_lea.hbm %s2120_s11, 256  ;;  %s1807_s10 = scalar_lea.hbm %s2169_s5, 512 }
 0x384   : > { %p1804_p13 = scmp.ne.s32.totalorder %s2120_s11, %s1803_s6  ;;  %p1808_p4 = scmp.lt.u32.totalorder %s2120_s11, %s2169_s5 }
 0x385   : > { %p1809_p7 = scmp.lt.u32.totalorder %s1807_s10, %s1803_s6  ;;  %p1811_p11 = scmp.lt.u32.totalorder %s1803_s6, %s2120_s11 }
 0x386   : > { %p1805_p6 = pnand %p1804_p13, %p2183_p0 }
 0x387   : > { %p1810_p8 = por %p1809_p7, %p1808_p4 }
 0x388   : > { %p1806_p10 = pneg %p1805_p6 }
 0x389   : > { %p1812_p1 = por %p1811_p11, %p1810_p8 }
 0x38b   : > { %p1813_p3 = pnand %p1812_p1, %p1806_p10 }
 0x38d   : > { %1816 = shalt.err (!%p1813_p3)
}
 0x38e   : > { %s1872_s29 = smov 128   ;;  %s1873_s8 = smov 8  }
 0x38f   : > { %1569 = dma.vmem_to_hbm [thread:$0]  (%p2183_p0), %s2115_s13, 256, %s2120_s11, %s1284_s14, %s1872_s29, %s1872_s29, %s1873_s8  }
 0x390 PF: > { %s1312_s9 = sand.u32 1, %s1847_s18   ;;  %p2184_p5 = scmp.ne.s32.totalorder %s2174_s25, 0 }
 0x391   : > { %p2185_p9 = scmp.ge.s32.totalorder %s1859_s21, 2  ;;  %s1313_s22 = scalar_lea.sflag [#allocation4], %s1312_s9 }
 0x393   : > { %p1583_p12 = pnand %p2185_p9, %p2184_p5 }
 0x395   : > { %1842 = dma.done.wait (!%p1583_p12), %s1313_s22, 256  }
 0x396   : > { %1844 = vsyncadd (!%p1583_p12), %s1313_s22, 4294967040  ;;  %p19_p2 = scmp.ge.s32.totalorder %s2014_s16, 4   ;;  %s2186_s18 = smov %s1851_s19 }
 0x397   : > { %s2187_s19 = smov %s1855_s20  ;;  %s2188_s20 = smov %s2023_s27 }
 0x398   : > { %s2189_s21 = smov %s2014_s16  ;;  %21 = sbr.rel (!%p19_p2) target bundleno = 6 (0x6), region = 93 }
 0x39f   :  { %1318 = vsyncpa [#allocation3], 1 }
 0x3a0   :  { %1320 = vsyncpa [#allocation3 + $0x1], 1 }
 0x3a1   :  { %1321 = vsyncpa [#allocation6], 1 }
 0x3a2   :  { %1322 = vsyncpa [#allocation4], 1 }
 0x3a3   :  { %1324 = vsyncpa [#allocation4 + $0x1], 1 }

</bundles_post_ra>
